<compile_context>
chip_gen: v5e
topology: v5e:2x2
jax: 0.10.0
libtpu: 0.0.40
codegen_flags: <defaults>
</compile_context>

<pallas_src>
import functools
import math

import jax
import jax.numpy as jnp
from jax import lax
from jax.experimental import pallas as pl
from jax.experimental.pallas import tpu as pltpu


# ----------------------------------------------------------------------------
# Geometry: 28x28 input flattened row-major (p = h*28 + w), padded to 896
# lanes per image.  Valid windows: conv1 p<=725 reads x<=783; conv2 p<=667
# reads conv1<=725; pool p<=638 reads <=667; conv3 p<=522 reads pool<=638.
# ----------------------------------------------------------------------------
_W = 28
_S = 896                                   # 784 -> padded to 7*128 lanes
_OFF1 = tuple(dy * _W + dx for dy in range(3) for dx in range(3))   # 0..58
_OFF3 = tuple(2 * o for o in _OFF1)                                  # 0..116


# ----------------------------------------------------------------------------
# pltpu.roll direction probe: we need a LEFT shift by `off` along lanes.
# The tiny probe kernel removes any ambiguity in the rotate direction.
# ----------------------------------------------------------------------------
@functools.lru_cache(maxsize=None)
def _roll_is_jnp_like() -> bool:
    def k(x_ref, o_ref):
        o_ref[...] = pltpu.roll(x_ref[...], shift=1, axis=1)

    x = jnp.arange(8 * 256, dtype=jnp.float32).reshape(8, 256)
    y = pl.pallas_call(k, out_shape=jax.ShapeDtypeStruct((8, 256), jnp.float32))(x)
    y = jax.block_until_ready(y)
    # jnp.roll semantics: out[0, 0] == x[0, 255] == 255.
    return bool(y[0, 0] == 255.0)


# ----------------------------------------------------------------------------
# Fused kernel factory: one grid step == B images, everything stays in VMEM.
# ----------------------------------------------------------------------------
def _make_kernel(B, roll_jnp_like):
    S = _S
    BS = B * S

    def lshift(v, off):
        # left shift by `off` along the lane axis (wrap lands in garbage rows)
        if off == 0:
            return v
        shift = (BS - off) if roll_jnp_like else off
        return pltpu.roll(v, shift=shift, axis=1)

    def kernel(x_ref, w1_ref, s1_ref, h1_ref,
               w2_ref, s2_ref, h2_ref,
               wt_ref, bt_ref,
               w3_ref, s3_ref, h3_ref,
               w4_ref, b4_ref,
               o_ref,
               a_ref, b_ref, r_ref):
        f32 = jnp.float32
        bf16 = jnp.bfloat16

        # ---- block1: 3x3 conv (1->12) + BN + ReLU.  Cin=1 -> 9 VPU
        #      broadcast-FMAs over the lane-dense slab, accumulated in VMEM.
        for t, off in enumerate(_OFF1):
            term = w1_ref[t] * lshift(x_ref[0], off)        # (16,1)*(1,BS)
            if t == 0:
                a_ref[...] = term
            else:
                a_ref[...] += term
        a_ref[...] = jnp.maximum(a_ref[...] * s1_ref[...] + h1_ref[...], 0.0)

        # ---- block2: 3x3 conv (12->8) + BN + ReLU as ONE matmul.
        #      im2col on K: 9 lane-shifted copies stacked along sublanes.
        for t, off in enumerate(_OFF1):
            r_ref[16 * t:16 * (t + 1), :] = lshift(a_ref[...], off).astype(bf16)
        x2 = jnp.dot(w2_ref[...], r_ref[...], preferred_element_type=f32)  # (8,BS)
        x2 = jnp.maximum(x2 * s2_ref[...] + h2_ref[...], 0.0)

        # ---- transition_block1: 1x1 conv (8->14) + bias (no BN / no ReLU).
        b_ref[...] = jnp.dot(wt_ref[...], x2.astype(bf16),
                             preferred_element_type=f32) + bt_ref[...]

        # ---- pool1: 2x2 stride-2 maxpool = 4 shifted elementwise maxes;
        #      valid outputs live at the even-(h,w) positions of the grid.
        a_ref[...] = jnp.maximum(
            jnp.maximum(b_ref[...], lshift(b_ref[...], 1)),
            jnp.maximum(lshift(b_ref[...], _W), lshift(b_ref[...], _W + 1)))

        # ---- block3: 3x3 conv (14->12) + BN + ReLU on the spacing-2 grid,
        #      again as a single im2col matmul.
        for t, off in enumerate(_OFF3):
            r_ref[16 * t:16 * (t + 1), :] = lshift(a_ref[...], off).astype(bf16)
        x4 = jnp.dot(w3_ref[...], r_ref[...], preferred_element_type=f32)  # (16,BS)
        x4 = jnp.maximum(x4 * s3_ref[...] + h3_ref[...], 0.0)

        # ---- block4: 1x1 conv (12->10) + bias + ReLU.
        x5 = jnp.maximum(
            jnp.dot(w4_ref[...], x4.astype(bf16),
                    preferred_element_type=f32) + b4_ref[...], 0.0)       # (16,BS)

        # ---- pool2 (global average over the 100 valid cells) + log_softmax.
        #      Masks are built in-kernel from iota (no constant-table input).
        p = lax.broadcasted_iota(jnp.int32, (1, S), 1)
        gmask = jnp.where((p % 2 == 0) & (p % 56 < 20) & (p <= 522),
                          0.01, 0.0).astype(f32)                          # (1,S)
        ch = lax.broadcasted_iota(jnp.int32, (16, 1), 0)
        neg = jnp.float32(-1e30)
        for b in range(B):
            seg = x5[:, b * S:(b + 1) * S]                                # (16,S)
            gap = jnp.sum(seg * gmask, axis=1, keepdims=True)             # (16,1)
            g = jnp.where(ch < 10, gap, neg)
            m = jnp.max(g, axis=0, keepdims=True)
            e = jnp.exp(g - m)
            lse = jnp.log(jnp.sum(e, axis=0, keepdims=True))
            o_ref[0, :, b:b + 1] = g - m - lse

    return kernel


# ----------------------------------------------------------------------------
# Parameter packing: pad channels to 8/16 sublanes, build im2col weight mats.
# ----------------------------------------------------------------------------
def _pack_params(p):
    f32, bf16 = jnp.float32, jnp.bfloat16

    def col(v, rows):
        v = v.astype(f32)
        return jnp.pad(v, (0, rows - v.shape[0])).reshape(rows, 1)

    # conv1: (3,3,1,12) -> (9, 16, 1)   [tap, cout_pad, 1]
    w1 = jnp.pad(p["w1"].reshape(9, 12), ((0, 0), (0, 4))).astype(f32)
    w1 = w1.reshape(9, 16, 1)
    # conv2: (3,3,12,8) -> (8, 144)     [cout, tap*16 + cin]
    w2 = jnp.pad(p["w2"].reshape(9, 12, 8), ((0, 0), (0, 4), (0, 0)))
    w2 = w2.reshape(144, 8).T.astype(bf16)
    # transition: (1,1,8,14) -> (16, 8) [cout_pad, cin]
    wt = jnp.pad(p["wt"].reshape(8, 14), ((0, 0), (0, 2))).T.astype(bf16)
    # conv3: (3,3,14,12) -> (16, 144)
    w3 = jnp.pad(p["w3"].reshape(9, 14, 12), ((0, 0), (0, 2), (0, 4)))
    w3 = w3.reshape(144, 16).T.astype(bf16)
    # conv4: (1,1,12,10) -> (16, 16)
    w4 = jnp.pad(p["w4"].reshape(12, 10), ((0, 4), (0, 6))).T.astype(bf16)

    return dict(
        w1=w1, s1=col(p["s1"], 16), h1=col(p["h1"], 16),
        w2=w2, s2=col(p["s2"], 8), h2=col(p["h2"], 8),
        wt=wt, bt=col(p["bt"], 16),
        w3=w3, s3=col(p["s3"], 16), h3=col(p["h3"], 16),
        w4=w4, b4=col(p["b4"], 16))


# ----------------------------------------------------------------------------
# Wrapper: single pallas_call for the whole forward pass.
# ----------------------------------------------------------------------------
@functools.partial(jax.jit, static_argnums=(2, 3))
def _forward_impl(x_nchw, params, B, roll_jnp_like):
    N = x_nchw.shape[0]
    S = _S
    BS = B * S
    G = -(-N // B)                 # number of grid steps (batch blocks)
    Npad = G * B

    # NCHW (C=1) -> flat row-major spatial in lanes, B images packed per row.
    xf = x_nchw.reshape(N, 28 * 28).astype(jnp.float32)
    xf = jnp.pad(xf, ((0, Npad - N), (0, S - 28 * 28)))
    x3 = xf.reshape(G, 1, BS)

    pk = _pack_params(params)
    kernel = _make_kernel(B, roll_jnp_like)

    full2 = lambda i: (0, 0)
    flops = int(2 * BS * (9 * 16 + 8 * 144 + 16 * 8 + 16 * 144 + 16 * 16) * G)

    out = pl.pallas_call(
        kernel,
        out_shape=jax.ShapeDtypeStruct((G, 16, B), jnp.float32),
        grid=(G,),
        in_specs=[
            pl.BlockSpec((1, 1, BS), lambda i: (i, 0, 0)),      # x (lane-dense)
            pl.BlockSpec((9, 16, 1), lambda i: (0, 0, 0)),      # w1
            pl.BlockSpec((16, 1), full2),                       # s1
            pl.BlockSpec((16, 1), full2),                       # h1
            pl.BlockSpec((8, 144), full2),                      # w2 (im2col, bf16)
            pl.BlockSpec((8, 1), full2),                        # s2
            pl.BlockSpec((8, 1), full2),                        # h2
            pl.BlockSpec((16, 8), full2),                       # wt (bf16)
            pl.BlockSpec((16, 1), full2),                       # bt
            pl.BlockSpec((16, 144), full2),                     # w3 (im2col, bf16)
            pl.BlockSpec((16, 1), full2),                       # s3
            pl.BlockSpec((16, 1), full2),                       # h3
            pl.BlockSpec((16, 16), full2),                      # w4 (bf16)
            pl.BlockSpec((16, 1), full2),                       # b4
        ],
        out_specs=pl.BlockSpec((1, 16, B), lambda i: (i, 0, 0)),
        scratch_shapes=[
            pltpu.VMEM((16, BS), jnp.float32),    # activation slab A
            pltpu.VMEM((16, BS), jnp.float32),    # activation slab B
            pltpu.VMEM((144, BS), jnp.bfloat16),  # shared im2col matrix
        ],
        compiler_params=pltpu.CompilerParams(
            dimension_semantics=("parallel",),
            vmem_limit_bytes=32 * 1024 * 1024),
        cost_estimate=pl.CostEstimate(
            flops=flops,
            transcendentals=int(Npad * 20),
            bytes_accessed=int(Npad * S * 4 + Npad * 16 * 4 + 16 * 1024)),
    )(x3, pk["w1"], pk["s1"], pk["h1"],
      pk["w2"], pk["s2"], pk["h2"],
      pk["wt"], pk["bt"],
      pk["w3"], pk["s3"], pk["h3"],
      pk["w4"], pk["b4"])

    # (G, 16ch, B) -> (Npad, 16) -> slice real images / real classes.
    logits = jnp.transpose(out, (0, 2, 1)).reshape(Npad, 16)
    return logits[:N, :10]


def model1_forward(x_nchw, params, block=8):
    return _forward_impl(x_nchw, params, block, _roll_is_jnp_like())


# ----------------------------------------------------------------------------
# Deterministic parameter construction (shapes from Model1.__init__).
# ----------------------------------------------------------------------------
def make_params(key):
    def conv_w(k, kh, kw, cin, cout):
        kw_, kb = jax.random.split(k)
        fan_in = kh * kw * cin
        w = jax.random.normal(kw_, (kh, kw, cin, cout), jnp.float32) / math.sqrt(fan_in)
        b = 0.1 * jax.random.normal(kb, (cout,), jnp.float32)
        return w, b

    def bn_fold(c, bias):
        # Deterministic BN params / running stats, folded for eval mode.
        gamma = jnp.linspace(0.9, 1.1, c, dtype=jnp.float32)
        beta = jnp.linspace(-0.05, 0.05, c, dtype=jnp.float32)
        mean = jnp.linspace(-0.1, 0.1, c, dtype=jnp.float32)
        var = jnp.linspace(0.5, 1.5, c, dtype=jnp.float32)
        scale = gamma / jnp.sqrt(var + 1e-5)
        shift = beta + (bias - mean) * scale
        return scale, shift

    keys = jax.random.split(key, 5)
    p = {}
    p["w1"], b1 = conv_w(keys[0], 3, 3, 1, 12)     # block1: Conv2d(1, 12, 3) + BN
    p["s1"], p["h1"] = bn_fold(12, b1)
    p["w2"], b2 = conv_w(keys[1], 3, 3, 12, 8)     # block2: Conv2d(12, 8, 3) + BN
    p["s2"], p["h2"] = bn_fold(8, b2)
    p["wt"], p["bt"] = conv_w(keys[2], 1, 1, 8, 14)   # transition_block1
    p["w3"], b3 = conv_w(keys[3], 3, 3, 14, 12)    # block3: Conv2d(14, 12, 3) + BN
    p["s3"], p["h3"] = bn_fold(12, b3)
    p["w4"], p["b4"] = conv_w(keys[4], 1, 1, 12, 10)  # block4
    return p


# ----------------------------------------------------------------------------
# Pure-JAX reference (XLA) for correctness checking.
# ----------------------------------------------------------------------------
def reference_forward(x_nchw, p):
    # TODO(synk): Dropout(0.1) is identity in eval mode; BN uses folded running stats.
    x = jnp.transpose(x_nchw, (0, 2, 3, 1)).astype(jnp.float32)
    conv = functools.partial(
        lax.conv_general_dilated, window_strides=(1, 1), padding="VALID",
        dimension_numbers=("NHWC", "HWIO", "NHWC"),
        precision=lax.Precision.HIGHEST)
    x = jnp.maximum(conv(x, p["w1"]) * p["s1"] + p["h1"], 0.0)
    x = jnp.maximum(conv(x, p["w2"]) * p["s2"] + p["h2"], 0.0)
    x = conv(x, p["wt"]) + p["bt"]
    x = lax.reduce_window(x, -jnp.inf, lax.max, (1, 2, 2, 1), (1, 2, 2, 1), "VALID")
    x = jnp.maximum(conv(x, p["w3"]) * p["s3"] + p["h3"], 0.0)
    x = jnp.maximum(conv(x, p["w4"]) + p["b4"], 0.0)
    x = jnp.mean(x, axis=(1, 2))                                   # (N, 10)
    return jax.nn.log_softmax(x, axis=-1)


if __name__ == "__main__":
    key = jax.random.PRNGKey(0)
    N = 16                                              # 2 grid steps of 8 images
    x = jax.random.normal(key, (N, 1, 28, 28), jnp.float32)   # MNIST-like NCHW
    params = make_params(jax.random.PRNGKey(42))

    out = model1_forward(x, params, block=8)
    out = jax.block_until_ready(out)

    assert out.shape == (N, 10), out.shape
    assert bool(jnp.all(jnp.isfinite(out)))
    # rows of exp(log_softmax) must sum to 1
    assert bool(jnp.allclose(jnp.sum(jnp.exp(out), axis=1), 1.0, atol=1e-3))

    ref = reference_forward(x, params)
    max_err = float(jnp.max(jnp.abs(out - ref)))
    assert bool(jnp.allclose(out, ref, atol=5e-2, rtol=5e-2)), (max_err, out, ref)
    print("KERNEL_OK")
</pallas_src>

<mosaic_0001>
module attributes {stable_mosaic.version = 11 : i64} {
  func.func @k(%arg0: memref<8x256xf32, #tpu.memory_space<vmem>>, %arg1: memref<8x256xf32, #tpu.memory_space<vmem>>) attributes {dimension_semantics = [], scalar_prefetch = 0 : i64, scratch_operands = 0 : i64, tpu.core_type = #tpu.core_type<tc>} {
    %c0 = arith.constant 0 : index
    %c0_0 = arith.constant 0 : index
    %0 = vector.load %arg0[%c0, %c0_0] : memref<8x256xf32, #tpu.memory_space<vmem>>, vector<8x256xf32>
    %c1_i32 = arith.constant 1 : i32
    %1 = tpu.dynamic_rotate %0 by %c1_i32 dim 1 : vector<8x256xf32>, i32 -> vector<8x256xf32>
    %c0_1 = arith.constant 0 : index
    %c0_2 = arith.constant 0 : index
    %2 = vector.load %arg1[%c0_1, %c0_2] : memref<8x256xf32, #tpu.memory_space<vmem>>, vector<8x256xf32>
    tpu.vector_store %arg1[%c0_1, %c0_2], %1 {strides = array<i32>} : memref<8x256xf32, #tpu.memory_space<vmem>>, vector<8x256xf32>,
    return
  }
}

</mosaic_0001>

<bundles_post_ra>
// kernel: tpu_custom_call.1
= control target key start
LH: loop header
LB: loop body
LE: loop exit
PB: predicated region body
PF: predicated region fallthrough
CT: control target
= control target key end

     0   :  { %6 = vsyncpa [#allocation3], 0  ;;  %s127_s0 = inlined_call_operand.hbm [shape: f32[8,256], index: 0, kind: input, shape index: {}]   ;;  %s128_s1 = inlined_call_operand.hbm [shape: f32[8,256], index: 1, kind: output, shape index: {}]  }
   0x1   :  { %7 = vsyncpa [#allocation4], 0  ;;  %s13_s8 = sshll.u32 %s127_s0, 4  ;;  %s108_s9 = smov [#allocation2]   ;;  %s14_s8 = int_to_ptr.hbm [resolvable:$true] %s13_s8 }
   0x2   :  { %s15_s10 = sshll.u32 %s108_s9, 4  ;;  %s16_s10 = int_to_ptr.vmem [resolvable:$true] %s15_s10 }
   0x3   :  { %18 = dma.hbm_to_vmem [thread:$0]  %s14_s8, 256, %s16_s10, [#allocation3]  }
   0x4   :  { %104 = dma.done.wait [#allocation3], 256  }
   0x5   :  { %105 = vsyncadd [#allocation3], 4294967040  ;;  %v23_v0 = vld [vmem:[#allocation2] sm:$0xff]  ;;  %s109_s11 = smov 1   ;;  %v24_v1 = vld [vmem:[#allocation2 + $0x8] sm:$0xff]  ;;  %v29_v2 = vlaneseq  ;;  %s110_s12 = smov [#allocation5]  }
   0x6   :  { %25 = vrot.lane.b32.xlu0 %v23_v0, %s109_s11  ;;  %s41_s13 = sshll.u32 %s110_s12, 4  ;;  %s43_s15 = sshll.u32 %s128_s1, 4  ;;  %s42_s13 = int_to_ptr.vmem [resolvable:$true] %s41_s13  ;;  %s44_s15 = int_to_ptr.hbm [resolvable:$true] %s43_s15 }
   0x7   :  { %v30_v4 = vand.u32 127, %v29_v2 }
   0x9   :  { %vm31_vm0 = vcmp.lt.s32.totalorder %v30_v4, 1 }
   0xe   :  { %27 = vrot.lane.b32.xlu0 %v24_v1, %s109_s11 }
  0x78   :  { %v26_v3 = vpop.permute.xlu0 %25 }
  0x80   :  { %v28_v5 = vpop.permute.xlu0 %27 }
  0x81   :  { %v32_v6 = vsel %vm31_vm0, %v26_v3, %v28_v5  ;;  %v33_v7 = vsel %vm31_vm0, %v28_v5, %v26_v3 }
  0x82   :  { %34 = vst [vmem:[#allocation5] sm:$0xff] %v33_v7 }
  0x83   :  { %35 = vst [vmem:[#allocation5 + $0x8] sm:$0xff] %v32_v6 }
  0x84   :  { %46 = dma.vmem_to_hbm [thread:$0]  %s42_s13, 256, %s44_s15, [#allocation4]  }
  0x85   :  { %106 = dma.done.wait [#allocation4], 256  }
  0x86   :  { %107 = vsyncadd [#allocation4], 4294967040 }
  0x87   :  { %51 = vsyncpa [#allocation3], 1 }
  0x88   :  { %52 = vsyncpa [#allocation4], 1 }

</bundles_post_ra>
